<compile_context>
chip_gen: v5e
topology: v5e:2x2
jax: 0.10.0
libtpu: 0.0.40
codegen_flags: <defaults>
</compile_context>

<pallas_src>
import functools

import jax
import jax.numpy as jnp
from jax.experimental import pallas as pl
from jax.experimental.pallas import tpu as pltpu

_MODE_BN_RELU = "bn_relu"   # Linear (no bias) -> BatchNorm1d -> ReLU
_MODE_RELU = "relu"         # Linear + bias -> ReLU               (bn=False)
_MODE_LINEAR = "linear"     # Linear + bias                       (no activation)

_EPS = 1e-5


def _round_up(n, m):
    return ((n + m - 1) // m) * m


def _vmem_capacity_bytes():
    """Physical VMEM per TensorCore (generation-aware), with a safe fallback."""
    try:
        return int(pltpu.get_tpu_info().vmem_capacity_bytes)
    except Exception:
        return 64 * 1024 * 1024  # conservative: v7x per-TC VMEM


# ----------------------------------------------------------------------------
# Shared epilogue (runs in f32 on a (B, n) slab already in vregs/VMEM)
# ----------------------------------------------------------------------------
def _apply_epilogue(y, mode, p, eps):
    """p is the packed (2, n) parameter slab: [gamma; beta] or [bias; unused]."""
    if mode == _MODE_BN_RELU:
        mean = jnp.mean(y, axis=0, keepdims=True)
        var = jnp.mean(jnp.square(y - mean), axis=0, keepdims=True)   # biased var
        y = (y - mean) * jax.lax.rsqrt(var + eps)
        y = y * p[0:1, :] + p[1:2, :]
        y = jnp.maximum(y, 0.0)
    else:
        y = y + p[0:1, :]
        if mode == _MODE_RELU:
            y = jnp.maximum(y, 0.0)
    return y


# ----------------------------------------------------------------------------
# Kernels
# ----------------------------------------------------------------------------
def _fused_mlp_kernel(*refs, modes, shapes, eps):
    """Whole MLP in one kernel.

    refs = [x_vmem, w_hbm_0..w_hbm_{L-1}, p_vmem_0..p_vmem_{L-1}, out_vmem,
            wbuf_scratch, dma_sem]
    Weights live in HBM and are double-buffered into `wbuf` so the next layer's
    weight DMA overlaps the current layer's matmul; activations stay in VMEM.
    """
    L = len(modes)
    x_ref = refs[0]
    w_refs = refs[1:1 + L]
    p_refs = refs[1 + L:1 + 2 * L]
    out_ref = refs[1 + 2 * L]
    wbuf = refs[2 + 2 * L]
    sem = refs[3 + 2 * L]

    def wcopy(i, slot):
        k, n = shapes[i]
        return pltpu.make_async_copy(w_refs[i], wbuf.at[slot, :k, :n], sem.at[slot])

    wcopy(0, 0).start()                      # prime slot 0
    x = x_ref[...]                           # (B, K0) bf16, already padded
    y = None
    for i, mode in enumerate(modes):         # static unroll over layers
        slot = i % 2
        if i + 1 < L:
            wcopy(i + 1, 1 - slot).start()   # prefetch next layer's weights
        wcopy(i, slot).wait()
        k, n = shapes[i]
        y = jnp.dot(x, wbuf[slot, :k, :n], preferred_element_type=jnp.float32)
        y = _apply_epilogue(y, mode, p_refs[i][...], eps)
        if i + 1 < L:
            x = y.astype(jnp.bfloat16)       # bf16 intermediates, never leave VMEM
    out_ref[...] = y.astype(out_ref.dtype)


def _tiled_layer_kernel(x_ref, w_ref, p_ref, out_ref, *, mode, eps):
    """One (Linear [+BN] [+ReLU]) layer, gridded over the output-feature axis."""
    y = jnp.dot(x_ref[...], w_ref[...], preferred_element_type=jnp.float32)
    y = _apply_epilogue(y, mode, p_ref[...], eps)
    out_ref[...] = y.astype(out_ref.dtype)


# ----------------------------------------------------------------------------
# Tile sizing (generation-aware; accounts for the full resident working set)
# ----------------------------------------------------------------------------
def _pick_tile_n(B, K, N, out_itemsize, vmem_limit_bytes, max_tile_n=None):
    """Largest multiple-of-128 divisor of N whose working set fits the budget."""
    budget = int(vmem_limit_bytes * 0.9) - (1 << 20)          # compiler headroom
    x_bytes = 2 * B * K * 2          # (B,K) bf16 block (double-buffer allocation;
                                     # constant block index => fetched only once)
    avail = budget - x_bytes
    per_col = (2 * K * 2             # double-buffered bf16 weight slab
               + 2 * 2 * 4           # double-buffered (2, tile_n) f32 params
               + 2 * B * out_itemsize  # double-buffered output slab
               + 4 * B * 4)          # in-kernel f32 temporaries (y, BN stats)
    cap = 128
    if avail > per_col * 128:
        cap = (avail // per_col) // 128 * 128
    cap = min(cap, 2048)             # diminishing returns beyond ~2048-wide slabs
    if max_tile_n is not None:
        cap = min(cap, max(128, (max_tile_n // 128) * 128))
    m = N // 128
    best = 128
    for d in range(1, m + 1):
        if m % d == 0 and 128 * d <= cap:
            best = 128 * d
    return best


# ----------------------------------------------------------------------------
# Per-layer tiled wrapper (grid over N, bf16 matmul inputs, parallel axis)
# ----------------------------------------------------------------------------
def linear_layer_tiled(x, w, params, *, mode, out_dtype, eps=_EPS,
                       vmem_limit_bytes=48 * 1024 * 1024, max_tile_n=None):
    """y = epilogue(x @ w).  BN stats need the full batch, so the grid is only
    over N (feature slabs); x stays resident as one (B, K) block. All feature
    widths are pre-padded to multiples of 128, and tile_n divides N exactly, so
    there is no per-call padding or dead compute."""
    B, K = x.shape
    Kw, N = w.shape
    assert K == Kw, (K, Kw)
    assert N % 128 == 0 and K % 128 == 0, (K, N)

    out_itemsize = jnp.dtype(out_dtype).itemsize
    tile_n = _pick_tile_n(B, K, N, out_itemsize, vmem_limit_bytes, max_tile_n)
    assert N % tile_n == 0, (N, tile_n)

    x_spec = pl.BlockSpec((B, K), lambda j: (0, 0))        # constant index: one fetch
    w_spec = pl.BlockSpec((K, tile_n), lambda j: (0, j))   # double-buffered slab
    p_spec = pl.BlockSpec((2, tile_n), lambda j: (0, j))   # packed gamma/beta | bias
    o_spec = pl.BlockSpec((B, tile_n), lambda j: (0, j))   # lane-dense output

    kernel = functools.partial(_tiled_layer_kernel, mode=mode, eps=eps)
    return pl.pallas_call(
        kernel,
        out_shape=jax.ShapeDtypeStruct((B, N), out_dtype),
        grid=(N // tile_n,),
        in_specs=[x_spec, w_spec, p_spec],
        out_specs=o_spec,
        compiler_params=pltpu.CompilerParams(
            dimension_semantics=("parallel",),   # v7x: 2 TCs split feature slabs
            vmem_limit_bytes=vmem_limit_bytes,
        ),
    )(x, w, params)


# ----------------------------------------------------------------------------
# Module
# ----------------------------------------------------------------------------
class MultiLayerPerceptronPallas:
    """JAX/Pallas port of MultiLayerPerceptron (forward semantics, train mode)."""

    def __init__(self, input_size, output_size, embed_sizes=(),
                 last_layer_activation=True, dropout=0, last_layer_dropout=False,
                 bn=True, *, key, fuse_vmem_budget=None, vmem_limit_bytes=None,
                 max_tile_n=None):
        del dropout, last_layer_dropout  # p=0 default -> identity (see TODO above)
        self.output_size = output_size
        self.max_tile_n = max_tile_n

        vmem_cap = _vmem_capacity_bytes()
        # Generation-aware budgets: ~3/4 of physical VMEM as the scoped limit
        # (v7x: 48 MiB of 64; v5e/v6e: 96 MiB of 128), half of physical for the
        # fused path's working set.
        self.vmem_limit = vmem_limit_bytes or max(32 << 20, (vmem_cap * 3) // 4)
        self.fuse_budget = fuse_vmem_budget or vmem_cap // 2

        # layers: (w_bf16 (Kp, Np), params_f32 (2, Np), mode)
        self.layers = []
        sizes = list(embed_sizes) + [output_size]
        n_layers = len(sizes)
        in_logical = input_size
        in_padded = _round_up(input_size, 128)  # lane/MXU-dense K, incl. first layer
        for i, out_sz in enumerate(sizes):
            is_last = i == n_layers - 1
            activation = (not is_last) or last_layer_activation
            if activation and bn:
                mode = _MODE_BN_RELU
            elif activation:
                mode = _MODE_RELU
            else:
                mode = _MODE_LINEAR

            out_padded = _round_up(out_sz, 128)
            key, wk, bk = jax.random.split(key, 3)
            bound = 1.0 / (in_logical ** 0.5)
            # PyTorch Linear stores (out, in); we store transposed (in, out).
            w = jax.random.uniform(wk, (in_logical, out_sz), jnp.float32, -bound, bound)
            b = jax.random.uniform(bk, (out_sz,), jnp.float32, -bound, bound)

            # Pre-laid-out, pre-cast params (hoisted out of the forward pass).
            # Zero-padded rows/cols are inert: padded features stay exactly 0
            # through Linear/BN/ReLU and contribute nothing to the next layer.
            w_p = (jnp.zeros((in_padded, out_padded), jnp.float32)
                   .at[:in_logical, :out_sz].set(w).astype(jnp.bfloat16))
            if mode == _MODE_BN_RELU:
                # Linear bias dropped: exactly cancelled by BN mean subtraction.
                p = jnp.stack([jnp.ones((out_padded,), jnp.float32),    # gamma init
                               jnp.zeros((out_padded,), jnp.float32)])  # beta init
            else:
                bias = jnp.zeros((out_padded,), jnp.float32).at[:out_sz].set(b)
                p = jnp.stack([bias, jnp.zeros((out_padded,), jnp.float32)])

            self.layers.append((w_p, p, mode))
            in_logical = out_sz
            in_padded = out_padded

    # -- path selection --------------------------------------------------------
    def _fits_fused(self, batch):
        total_w_bytes = sum(int(w.size) * 2 for w, _, _ in self.layers)
        if total_w_bytes > self.fuse_budget:
            # Big models: stream weights via the tiled path (also lets a 2-TC chip
            # split the feature axis across cores).
            return False
        max_k = max(w.shape[0] for w, _, _ in self.layers)
        max_n = max(w.shape[1] for w, _, _ in self.layers)
        need = (batch * self.layers[0][0].shape[0] * 2        # resident bf16 x
                + 2 * max_k * max_n * 2                       # dbl-buffered weight scratch
                + sum(int(p.size) * 4 for _, p, _ in self.layers)
                + 3 * batch * max_n * 4                       # activation temporaries
                + batch * self.layers[-1][0].shape[1] * 4)    # f32 output
        return need <= self.fuse_budget

    # -- fused whole-network forward (HBM weights, manual double-buffer) -------
    def _fused_forward(self, x_p):
        B = x_p.shape[0]
        L = len(self.layers)
        modes = tuple(m for _, _, m in self.layers)
        shapes = tuple(w.shape for w, _, _ in self.layers)
        max_k = max(s[0] for s in shapes)
        max_n = max(s[1] for s in shapes)
        n_out = shapes[-1][1]

        args = [x_p] + [w for w, _, _ in self.layers] + [p for _, p, _ in self.layers]
        vmem = pl.BlockSpec(memory_space=pltpu.MemorySpace.VMEM)
        hbm = pl.BlockSpec(memory_space=pl.ANY)
        in_specs = [vmem] + [hbm] * L + [vmem] * L

        kernel = functools.partial(_fused_mlp_kernel, modes=modes, shapes=shapes,
                                   eps=_EPS)
        return pl.pallas_call(
            kernel,
            out_shape=jax.ShapeDtypeStruct((B, n_out), jnp.float32),
            in_specs=in_specs,
            out_specs=vmem,
            scratch_shapes=[pltpu.VMEM((2, max_k, max_n), jnp.bfloat16),
                            pltpu.SemaphoreType.DMA((2,))],
            compiler_params=pltpu.CompilerParams(vmem_limit_bytes=self.vmem_limit),
        )(*args)

    # -- per-layer tiled forward (large models) --------------------------------
    def _tiled_forward(self, x_p):
        L = len(self.layers)
        for i, (w, p, mode) in enumerate(self.layers):
            # bf16 intermediates go straight to HBM (half the activation traffic);
            # only the final layer is written in f32.
            out_dtype = jnp.float32 if i == L - 1 else jnp.bfloat16
            x_p = linear_layer_tiled(x_p, w, p, mode=mode, out_dtype=out_dtype,
                                     vmem_limit_bytes=self.vmem_limit,
                                     max_tile_n=self.max_tile_n)
        return x_p

    def __call__(self, x, *, force_tiled=False):
        B, f_in = x.shape
        k0 = self.layers[0][0].shape[0]
        x_p = x if f_in == k0 else jnp.pad(x, ((0, 0), (0, k0 - f_in)))
        x_p = x_p.astype(jnp.bfloat16)   # single up-front cast; layers stay bf16
        if (not force_tiled) and self._fits_fused(B):
            out = self._fused_forward(x_p)
        else:
            out = self._tiled_forward(x_p)
        return out[:, :self.output_size]


# ----------------------------------------------------------------------------
# Pure-JAX reference (same padded bf16 weights / bf16 intermediates).
# ----------------------------------------------------------------------------
def _reference_forward(model, x):
    k0 = model.layers[0][0].shape[0]
    y = x if x.shape[1] == k0 else jnp.pad(x, ((0, 0), (0, k0 - x.shape[1])))
    y = y.astype(jnp.bfloat16)
    L = len(model.layers)
    for i, (w, p, mode) in enumerate(model.layers):
        z = jnp.dot(y, w, preferred_element_type=jnp.float32)
        if mode == _MODE_BN_RELU:
            mean = jnp.mean(z, axis=0, keepdims=True)
            var = jnp.mean(jnp.square(z - mean), axis=0, keepdims=True)
            z = (z - mean) / jnp.sqrt(var + _EPS) * p[0:1] + p[1:2]
            z = jnp.maximum(z, 0.0)
        else:
            z = z + p[0:1]
            if mode == _MODE_RELU:
                z = jnp.maximum(z, 0.0)
        y = z.astype(jnp.bfloat16) if i + 1 < L else z
    return y[:, :model.output_size]


if __name__ == "__main__":
    key = jax.random.PRNGKey(0)
    key, xk, pk, x2k, p2k = jax.random.split(key, 5)

    # --- Config 1: small MLP; exercises fused path and single-tile tiled path ---
    batch, input_size, output_size = 8, 32, 16
    embed_sizes = [64]
    model = MultiLayerPerceptronPallas(
        input_size, output_size, embed_sizes=embed_sizes,
        last_layer_activation=True, dropout=0, last_layer_dropout=False,
        bn=True, key=pk)

    x = jax.random.normal(xk, (batch, input_size), jnp.float32)

    out_fused = model(x)                       # one fused kernel, HBM-weight DMA overlap
    out_tiled = model(x, force_tiled=True)     # per-layer N-tiled kernels
    ref = _reference_forward(model, x)
    jax.block_until_ready((out_fused, out_tiled, ref))

    assert out_fused.shape == (batch, output_size), out_fused.shape
    assert out_tiled.shape == (batch, output_size), out_tiled.shape
    assert bool(jnp.all(jnp.isfinite(out_fused)))
    assert bool(jnp.allclose(out_fused, ref, atol=5e-2, rtol=5e-2))
    assert bool(jnp.allclose(out_tiled, ref, atol=5e-2, rtol=5e-2))

    # --- Config 2: wider layers with a forced small tile_n so the feature grid
    #     has >1 step (validates N-slab tiling + BN-over-full-batch invariant) ---
    model2 = MultiLayerPerceptronPallas(
        48, 192, embed_sizes=[320], last_layer_activation=True, bn=True,
        key=p2k, max_tile_n=128)
    x2 = jax.random.normal(x2k, (16, 48), jnp.float32)
    out2_tiled = model2(x2, force_tiled=True)
    out2_fused = model2(x2)
    ref2 = _reference_forward(model2, x2)
    jax.block_until_ready((out2_tiled, out2_fused, ref2))

    assert out2_tiled.shape == (16, 192), out2_tiled.shape
    assert bool(jnp.allclose(out2_tiled, ref2, atol=5e-2, rtol=5e-2))
    assert bool(jnp.allclose(out2_fused, ref2, atol=5e-2, rtol=5e-2))

    print("KERNEL_OK")
</pallas_src>

<mosaic_0001>
module attributes {stable_mosaic.version = 11 : i64} {
  func.func @_fused_mlp_kernel(%arg0: memref<8x128xbf16, #tpu.memory_space<vmem>>, %arg1: memref<128x128xbf16, #tpu.memory_space<any>>, %arg2: memref<128x128xbf16, #tpu.memory_space<any>>, %arg3: memref<2x128xf32, #tpu.memory_space<vmem>>, %arg4: memref<2x128xf32, #tpu.memory_space<vmem>>, %arg5: memref<8x128xf32, #tpu.memory_space<vmem>>, %arg6: memref<2x128x128xbf16, #tpu.memory_space<vmem>>, %arg7: memref<2x!tpu.dma_semaphore, #tpu.memory_space<semaphore_mem>>) attributes {dimension_semantics = [], scalar_prefetch = 0 : i64, scratch_operands = 2 : i64, tpu.core_type = #tpu.core_type<tc>} {
    %c0_i32 = arith.constant 0 : i32
    %c0_i32_0 = arith.constant 0 : i32
    %c0_i32_1 = arith.constant 0 : i32
    %c0_i32_2 = arith.constant 0 : i32
    %0 = tpu.memref_slice %arg6[%c0_i32, %c0_i32_1, %c0_i32_2] : memref<2x128x128xbf16, #tpu.memory_space<vmem>> -> memref<1x128x128xbf16, #tpu.memory_space<vmem>>
    %1 = tpu.memref_squeeze %0 : memref<1x128x128xbf16, #tpu.memory_space<vmem>> -> memref<128x128xbf16, #tpu.memory_space<vmem>>
    %2 = tpu.memref_slice %arg7[%c0_i32_0] : memref<2x!tpu.dma_semaphore, #tpu.memory_space<semaphore_mem>> -> memref<1x!tpu.dma_semaphore, #tpu.memory_space<semaphore_mem>>
    %3 = tpu.memref_squeeze %2 : memref<1x!tpu.dma_semaphore, #tpu.memory_space<semaphore_mem>> -> memref<!tpu.dma_semaphore, #tpu.memory_space<semaphore_mem>>
    tpu.enqueue_dma source(%arg1 : memref<128x128xbf16, #tpu.memory_space<any>>) target(%1 : memref<128x128xbf16, #tpu.memory_space<vmem>>) target_semaphore(%3 : memref<!tpu.dma_semaphore, #tpu.memory_space<semaphore_mem>>)
    %c0 = arith.constant 0 : index
    %c0_3 = arith.constant 0 : index
    %4 = vector.load %arg0[%c0, %c0_3] : memref<8x128xbf16, #tpu.memory_space<vmem>>, vector<8x128xbf16>
    %c1_i32 = arith.constant 1 : i32
    %c1_i32_4 = arith.constant 1 : i32
    %c0_i32_5 = arith.constant 0 : i32
    %c0_i32_6 = arith.constant 0 : i32
    %5 = tpu.memref_slice %arg6[%c1_i32, %c0_i32_5, %c0_i32_6] : memref<2x128x128xbf16, #tpu.memory_space<vmem>> -> memref<1x128x128xbf16, #tpu.memory_space<vmem>>
    %6 = tpu.memref_squeeze %5 : memref<1x128x128xbf16, #tpu.memory_space<vmem>> -> memref<128x128xbf16, #tpu.memory_space<vmem>>
    %7 = tpu.memref_slice %arg7[%c1_i32_4] : memref<2x!tpu.dma_semaphore, #tpu.memory_space<semaphore_mem>> -> memref<1x!tpu.dma_semaphore, #tpu.memory_space<semaphore_mem>>
    %8 = tpu.memref_squeeze %7 : memref<1x!tpu.dma_semaphore, #tpu.memory_space<semaphore_mem>> -> memref<!tpu.dma_semaphore, #tpu.memory_space<semaphore_mem>>
    tpu.enqueue_dma source(%arg2 : memref<128x128xbf16, #tpu.memory_space<any>>) target(%6 : memref<128x128xbf16, #tpu.memory_space<vmem>>) target_semaphore(%8 : memref<!tpu.dma_semaphore, #tpu.memory_space<semaphore_mem>>)
    %c0_i32_7 = arith.constant 0 : i32
    %c0_i32_8 = arith.constant 0 : i32
    %c0_i32_9 = arith.constant 0 : i32
    %c0_i32_10 = arith.constant 0 : i32
    %9 = tpu.memref_slice %arg6[%c0_i32_7, %c0_i32_9, %c0_i32_10] : memref<2x128x128xbf16, #tpu.memory_space<vmem>> -> memref<1x128x128xbf16, #tpu.memory_space<vmem>>
    %10 = tpu.memref_squeeze %9 : memref<1x128x128xbf16, #tpu.memory_space<vmem>> -> memref<128x128xbf16, #tpu.memory_space<vmem>>
    %11 = tpu.memref_slice %arg7[%c0_i32_8] : memref<2x!tpu.dma_semaphore, #tpu.memory_space<semaphore_mem>> -> memref<1x!tpu.dma_semaphore, #tpu.memory_space<semaphore_mem>>
    %12 = tpu.memref_squeeze %11 : memref<1x!tpu.dma_semaphore, #tpu.memory_space<semaphore_mem>> -> memref<!tpu.dma_semaphore, #tpu.memory_space<semaphore_mem>>
    tpu.wait_dma2 semaphore(%12 : memref<!tpu.dma_semaphore, #tpu.memory_space<semaphore_mem>>) src(%arg1 : memref<128x128xbf16, #tpu.memory_space<any>>) dst(%10 : memref<128x128xbf16, #tpu.memory_space<vmem>>)
    %c0_11 = arith.constant 0 : index
    %c0_12 = arith.constant 0 : index
    %c0_13 = arith.constant 0 : index
    %13 = vector.load %arg6[%c0_11, %c0_12, %c0_13] : memref<2x128x128xbf16, #tpu.memory_space<vmem>>, vector<1x128x128xbf16>
    %14 = vector.shape_cast %13 : vector<1x128x128xbf16> to vector<128x128xbf16>
    %cst = arith.constant dense<0.000000e+00> : vector<8x128xf32>
    %15 = tpu.matmul %4, %14, %cst {dimension_numbers = #tpu.dot_dimension_numbers<[1], [0], [0], [1], [0, 0, 1, 1], [], []>} : vector<8x128xbf16>, vector<128x128xbf16>, vector<8x128xf32> -> vector<8x128xf32>
    %c0_14 = arith.constant 0 : index
    %c0_15 = arith.constant 0 : index
    %16 = vector.load %arg3[%c0_14, %c0_15] : memref<2x128xf32, #tpu.memory_space<vmem>>, vector<2x128xf32>
    %cst_16 = arith.constant dense<0.000000e+00> : vector<128xf32>
    %17 = vector.multi_reduction <add>, %15, %cst_16 [0] : vector<8x128xf32> to vector<128xf32>
    %18 = vector.shape_cast %17 : vector<128xf32> to vector<1x128xf32>
    %cst_17 = arith.constant 8.000000e+00 : f32
    %19 = vector.broadcast %cst_17 : f32 to vector<1x128xf32>
    %20 = arith.divf %18, %19 : vector<1x128xf32>
    %21 = vector.broadcast %20 : vector<1x128xf32> to vector<8x128xf32>
    %22 = arith.subf %15, %21 : vector<8x128xf32>
    %23 = arith.mulf %22, %22 : vector<8x128xf32>
    %cst_18 = arith.constant dense<0.000000e+00> : vector<128xf32>
    %24 = vector.multi_reduction <add>, %23, %cst_18 [0] : vector<8x128xf32> to vector<128xf32>
    %25 = vector.shape_cast %24 : vector<128xf32> to vector<1x128xf32>
    %cst_19 = arith.constant 8.000000e+00 : f32
    %26 = vector.broadcast %cst_19 : f32 to vector<1x128xf32>
    %27 = arith.divf %25, %26 : vector<1x128xf32>
    %28 = vector.broadcast %20 : vector<1x128xf32> to vector<8x128xf32>
    %29 = arith.subf %15, %28 : vector<8x128xf32>
    %cst_20 = arith.constant 9.99999974E-6 : f32
    %30 = vector.broadcast %cst_20 : f32 to vector<1x128xf32>
    %31 = arith.addf %27, %30 : vector<1x128xf32>
    %32 = math.rsqrt %31 : vector<1x128xf32>
    %33 = vector.broadcast %32 : vector<1x128xf32> to vector<8x128xf32>
    %34 = arith.mulf %29, %33 : vector<8x128xf32>
    %35 = vector.extract_strided_slice %16 {offsets = [0, 0], sizes = [1, 128], strides = [1, 1]} : vector<2x128xf32> to vector<1x128xf32>
    %36 = vector.broadcast %35 : vector<1x128xf32> to vector<8x128xf32>
    %37 = arith.mulf %34, %36 : vector<8x128xf32>
    %38 = vector.extract_strided_slice %16 {offsets = [1, 0], sizes = [1, 128], strides = [1, 1]} : vector<2x128xf32> to vector<1x128xf32>
    %39 = vector.broadcast %38 : vector<1x128xf32> to vector<8x128xf32>
    %40 = arith.addf %37, %39 : vector<8x128xf32>
    %cst_21 = arith.constant 0.000000e+00 : f32
    %41 = vector.broadcast %cst_21 : f32 to vector<8x128xf32>
    %42 = arith.maximumf %40, %41 : vector<8x128xf32>
    %43 = arith.truncf %42 : vector<8x128xf32> to vector<8x128xbf16>
    %c1_i32_22 = arith.constant 1 : i32
    %c1_i32_23 = arith.constant 1 : i32
    %c0_i32_24 = arith.constant 0 : i32
    %c0_i32_25 = arith.constant 0 : i32
    %44 = tpu.memref_slice %arg6[%c1_i32_22, %c0_i32_24, %c0_i32_25] : memref<2x128x128xbf16, #tpu.memory_space<vmem>> -> memref<1x128x128xbf16, #tpu.memory_space<vmem>>
    %45 = tpu.memref_squeeze %44 : memref<1x128x128xbf16, #tpu.memory_space<vmem>> -> memref<128x128xbf16, #tpu.memory_space<vmem>>
    %46 = tpu.memref_slice %arg7[%c1_i32_23] : memref<2x!tpu.dma_semaphore, #tpu.memory_space<semaphore_mem>> -> memref<1x!tpu.dma_semaphore, #tpu.memory_space<semaphore_mem>>
    %47 = tpu.memref_squeeze %46 : memref<1x!tpu.dma_semaphore, #tpu.memory_space<semaphore_mem>> -> memref<!tpu.dma_semaphore, #tpu.memory_space<semaphore_mem>>
    tpu.wait_dma2 semaphore(%47 : memref<!tpu.dma_semaphore, #tpu.memory_space<semaphore_mem>>) src(%arg2 : memref<128x128xbf16, #tpu.memory_space<any>>) dst(%45 : memref<128x128xbf16, #tpu.memory_space<vmem>>)
    %c1 = arith.constant 1 : index
    %c0_26 = arith.constant 0 : index
    %c0_27 = arith.constant 0 : index
    %48 = vector.load %arg6[%c1, %c0_26, %c0_27] : memref<2x128x128xbf16, #tpu.memory_space<vmem>>, vector<1x128x128xbf16>
    %49 = vector.shape_cast %48 : vector<1x128x128xbf16> to vector<128x128xbf16>
    %cst_28 = arith.constant dense<0.000000e+00> : vector<8x128xf32>
    %50 = tpu.matmul %43, %49, %cst_28 {dimension_numbers = #tpu.dot_dimension_numbers<[1], [0], [0], [1], [0, 0, 1, 1], [], []>} : vector<8x128xbf16>, vector<128x128xbf16>, vector<8x128xf32> -> vector<8x128xf32>
    %c0_29 = arith.constant 0 : index
    %c0_30 = arith.constant 0 : index
    %51 = vector.load %arg4[%c0_29, %c0_30] : memref<2x128xf32, #tpu.memory_space<vmem>>, vector<2x128xf32>
    %cst_31 = arith.constant dense<0.000000e+00> : vector<128xf32>
    %52 = vector.multi_reduction <add>, %50, %cst_31 [0] : vector<8x128xf32> to vector<128xf32>
    %53 = vector.shape_cast %52 : vector<128xf32> to vector<1x128xf32>
    %cst_32 = arith.constant 8.000000e+00 : f32
    %54 = vector.broadcast %cst_32 : f32 to vector<1x128xf32>
    %55 = arith.divf %53, %54 : vector<1x128xf32>
    %56 = vector.broadcast %55 : vector<1x128xf32> to vector<8x128xf32>
    %57 = arith.subf %50, %56 : vector<8x128xf32>
    %58 = arith.mulf %57, %57 : vector<8x128xf32>
    %cst_33 = arith.constant dense<0.000000e+00> : vector<128xf32>
    %59 = vector.multi_reduction <add>, %58, %cst_33 [0] : vector<8x128xf32> to vector<128xf32>
    %60 = vector.shape_cast %59 : vector<128xf32> to vector<1x128xf32>
    %cst_34 = arith.constant 8.000000e+00 : f32
    %61 = vector.broadcast %cst_34 : f32 to vector<1x128xf32>
    %62 = arith.divf %60, %61 : vector<1x128xf32>
    %63 = vector.broadcast %55 : vector<1x128xf32> to vector<8x128xf32>
    %64 = arith.subf %50, %63 : vector<8x128xf32>
    %cst_35 = arith.constant 9.99999974E-6 : f32
    %65 = vector.broadcast %cst_35 : f32 to vector<1x128xf32>
    %66 = arith.addf %62, %65 : vector<1x128xf32>
    %67 = math.rsqrt %66 : vector<1x128xf32>
    %68 = vector.broadcast %67 : vector<1x128xf32> to vector<8x128xf32>
    %69 = arith.mulf %64, %68 : vector<8x128xf32>
    %70 = vector.extract_strided_slice %51 {offsets = [0, 0], sizes = [1, 128], strides = [1, 1]} : vector<2x128xf32> to vector<1x128xf32>
    %71 = vector.broadcast %70 : vector<1x128xf32> to vector<8x128xf32>
    %72 = arith.mulf %69, %71 : vector<8x128xf32>
    %73 = vector.extract_strided_slice %51 {offsets = [1, 0], sizes = [1, 128], strides = [1, 1]} : vector<2x128xf32> to vector<1x128xf32>
    %74 = vector.broadcast %73 : vector<1x128xf32> to vector<8x128xf32>
    %75 = arith.addf %72, %74 : vector<8x128xf32>
    %cst_36 = arith.constant 0.000000e+00 : f32
    %76 = vector.broadcast %cst_36 : f32 to vector<8x128xf32>
    %77 = arith.maximumf %75, %76 : vector<8x128xf32>
    %c0_37 = arith.constant 0 : index
    %c0_38 = arith.constant 0 : index
    %78 = vector.load %arg5[%c0_37, %c0_38] : memref<8x128xf32, #tpu.memory_space<vmem>>, vector<8x128xf32>
    tpu.vector_store %arg5[%c0_37, %c0_38], %77 {strides = array<i32>} : memref<8x128xf32, #tpu.memory_space<vmem>>, vector<8x128xf32>,
    return
  }
}

</mosaic_0001>

<bundles_post_ra>
// kernel: tpu_custom_call.1
= control target key start
LH: loop header
LB: loop body
LE: loop exit
PB: predicated region body
PF: predicated region fallthrough
CT: control target
= control target key end

     0   :  { %10 = vsyncpa [#allocation5], 0  ;;  %s626_s0 = inlined_call_operand.hbm [shape: bf16[8,128], index: 0, kind: input, shape index: {}]   ;;  %s627_s1 = inlined_call_operand.hbm [shape: bf16[128,128], index: 1, kind: input, shape index: {}]   ;;  %s628_s2 = inlined_call_operand.hbm [shape: bf16[128,128], index: 2, kind: input, shape index: {}]   ;;  %s629_s3 = inlined_call_operand.vmem [shape: f32[2,128], index: 3, kind: input, shape index: {}]   ;;  %s630_s4 = inlined_call_operand.hbm [shape: f32[2,128], index: 4, kind: input, shape index: {}]   ;;  %s631_s5 = inlined_call_operand.hbm [shape: f32[8,128], index: 5, kind: output, shape index: {}]  }
   0x1   :  { %11 = vsyncpa [#allocation8], 0 }
   0x2   :  { %12 = vsyncpa [#allocation6], 0  ;;  %s18_s20 = sshll.u32 %s626_s0, 4  ;;  %s566_s21 = smov [#allocation4]   ;;  %s19_s20 = int_to_ptr.hbm [resolvable:$true] %s18_s20 }
   0x3   :  { %s20_s22 = sshll.u32 %s566_s21, 4  ;;  %s31_s25 = sshll.u32 %s630_s4, 4  ;;  %s21_s22 = int_to_ptr.vmem [resolvable:$true] %s20_s22  ;;  %s32_s25 = int_to_ptr.hbm [resolvable:$true] %s31_s25 }
   0x4   :  { %23 = dma.hbm_to_vmem [thread:$0]  %s19_s20, 64, %s21_s22, [#allocation5]  }
   0x5   :  { %s567_s26 = smov [#allocation7]  }
   0x6   :  { %s33_s27 = sshll.u32 %s567_s26, 4  ;;  %s34_s27 = int_to_ptr.vmem [resolvable:$true] %s33_s27 }
   0x7   :  { %36 = dma.hbm_to_vmem [thread:$0]  %s32_s25, 32, %s34_s27, [#allocation8]  }
   0x8   :  { %556 = dma.done.wait [#allocation5], 64  }
   0x9   :  { %557 = vsyncadd [#allocation5], 4294967232 }
   0xa   :  { %558 = dma.done.wait [#allocation8], 32  }
   0xb   :  { %559 = vsyncadd [#allocation8], 4294967264  ;;  %s52_s29 = sshll.u32 %s627_s1, 4  ;;  %s568_s30 = smov [#allocation2]   ;;  %v58_v0 = vld [vmem:[#allocation4] sm:$0xf]  ;;  %s53_s29 = int_to_ptr.hbm [resolvable:$true] %s52_s29 }
   0xc   :  { %s54_s6 = sshll.u32 %s568_s30, 4  ;;  %s68_s8 = sshll.u32 %s628_s2, 4  ;;  %s55_s6 = int_to_ptr.vmem [resolvable:$true] %s54_s6  ;;  %s69_s8 = int_to_ptr.hbm [resolvable:$true] %s68_s8 }
   0xd   :  { %57 = dma.hbm_to_vmem [thread:$0]  %s53_s29, 1024, %s55_s6, [#allocation3] }
   0xe   :  { %s569_s9 = smov [#allocation2 + $0x40]  }
   0xf   :  { %s70_s10 = sshll.u32 %s569_s9, 4  ;;  %s71_s10 = int_to_ptr.vmem [resolvable:$true] %s70_s10 }
  0x10   :  { %73 = dma.hbm_to_vmem [thread:$0]  %s69_s8, 1024, %s71_s10, [#allocation3 + $0x1] }
  0x11   :  { %560 = dma.done.wait [#allocation3], 1024 }
  0x12   :  { %561 = vsyncadd [#allocation3], 4294966272  ;;  %v415_v1 = vld [vmem:[#allocation2 + $0x38] sm:$0xff]  ;;  %v414_v2 = vld [vmem:[#allocation2 + $0x30] sm:$0xff]  ;;  %v570_v9 = vmov 8.0  }
  0x13   :  { %142 = vmatpush.bf16.msra.mxu0 %v415_v1  ;;  %v413_v3 = vld [vmem:[#allocation2 + $0x28] sm:$0xff]  ;;  %v412_v4 = vld [vmem:[#allocation2 + $0x20] sm:$0xff]  ;;  %v411_v5 = vld [vmem:[#allocation2 + $0x18] sm:$0xff]  ;;  %430 = vrcp.f32 %v570_v9 }
  0x14   :  { %v410_v6 = vld [vmem:[#allocation2 + $0x10] sm:$0xff]  ;;  %v409_v7 = vld [vmem:[#allocation2 + $0x8] sm:$0xff]  ;;  %v408_v8 = vld [vmem:[#allocation2] sm:$0xff] }
  0x15   :  { %v155_v39 = vld [vmem:[%s629_s3] sm:$0x3] }
  0x16   :  { %v191_v42 = vperm.slane %v155_v39, 0  ;;  %v193_v45 = vperm.slane %v155_v39, 1 }
  0x17   :  { %143 = vmatpush.bf16.msra.mxu0 %v414_v2 }
  0x19   :  { %v431_v10 = vpop.eup %430 }
  0x1a   :  { %v163_v11 = vmul.f32 8.0, %v431_v10  ;;  %vm167_vm0 = vweird.f32 %v431_v10 }
  0x1b   :  { %144 = vmatpush.bf16.msra.mxu0 %v413_v3 }
  0x1c   :  { %v164_v12 = vsub.f32 1.0, %v163_v11 }
  0x1e   :  { %v165_v15 = vmul.f32 %v431_v10, %v164_v12 }
  0x1f   :  { %145 = vmatpush.bf16.msra.mxu0 %v412_v4 }
  0x20   :  { %v166_v18 = vadd.f32 %v431_v10, %v165_v15 }
  0x22   :  { %v614_v22 = vsel %vm167_vm0, %v431_v10, %v166_v18 }
  0x23   :  { %146 = vmatpush.bf16.msra.mxu0 %v411_v5 }
  0x27   :  { %147 = vmatpush.bf16.msra.mxu0 %v410_v6 }
  0x2b   :  { %148 = vmatpush.bf16.msra.mxu0 %v409_v7 }
  0x2f   :  { %149 = vmatpush.bf16.msra.mxu0 %v408_v8 }
  0x32   :  { %150 = vmatmul.bf16.vlgmr.msra.gmra.mxu0 %v58_v0 }
  0xaf   :  { %v151_v13 = vpop.f32.mrf.mxu0 }
  0xb0   :  { %v156_v14 = vrot.slane %v151_v13, 4 }
  0xb2   :  { %v157_v16 = vadd.f32 %v156_v14, %v151_v13 }
  0xb4   :  { %v158_v17 = vrot.slane %v157_v16, 2 }
  0xb6   :  { %v159_v19 = vadd.f32 %v158_v17, %v157_v16 }
  0xb7   :  { %v153_v20 = vpop.f32.mrf.mxu0 }
  0xb8   :  { %v160_v21 = vrot.slane %v159_v19, 1 }
  0xba   :  { %v161_v23 = vadd.f32 %v160_v21, %v159_v19 }
  0xbc   :  { %v169_v24 = vmul.f32 %v614_v22, %v161_v23 }
  0xbe   :  { %v170_v25 = vsub.f32 %v151_v13, %v169_v24 }
  0xc0   :  { %v171_v26 = vmul.f32 %v170_v25, %v170_v25 }
  0xc2   :  { %v172_v27 = vrot.slane %v171_v26, 4 }
  0xc4   :  { %v173_v28 = vadd.f32 %v172_v27, %v171_v26 }
  0xc6   :  { %v174_v29 = vrot.slane %v173_v28, 2 }
  0xc8   :  { %v175_v30 = vadd.f32 %v174_v29, %v173_v28 }
  0xca   :  { %v176_v31 = vrot.slane %v175_v30, 1 }
  0xcc   :  { %v177_v32 = vadd.f32 %v176_v31, %v175_v30 }
  0xce   :  { %v178_v33 = vmul.f32 %v177_v32, %v614_v22 }
  0xd0   :  { %v179_v34 = vadd.f32 1e-05, %v178_v33 }
  0xd2   :  { %432 = vrsqrt.f32 %v179_v34  ;;  %vm186_vm2 = vweird.f32 %v179_v34 }
  0xd8   :  { %v433_v35 = vpop.eup %432 }
  0xd9   :  { %v181_v36 = vmul.f32 %v433_v35, %v179_v34  ;;  %vm187_vm1 = vweird.f32 %v433_v35 }
  0xda   :  { %vm188_vm3 = vmor %vm186_vm2, %vm187_vm1 }
  0xdb   :  { %v182_v37 = vmul.f32 %v433_v35, %v181_v36 }
  0xdd   :  { %v183_v38 = vmul.f32 0.5, %v182_v37 }
  0xdf   :  { %v184_v40 = vsub.f32 1.5, %v183_v38 }
  0xe1   :  { %v185_v41 = vmul.f32 %v433_v35, %v184_v40 }
  0xe3   :  { %v189_v43 = vsel %vm188_vm3, %v433_v35, %v185_v41 }
  0xe4   :  { %v190_v44 = vmul.f32 %v189_v43, %v170_v25 }
  0xe6   :  { %v192_v46 = vmul.f32 %v191_v42, %v190_v44 }
  0xe8   :  { %v194_v47 = vadd.f32 %v193_v45, %v192_v46 }
  0xea   :  { %v195_v48 = vmax.f32 %v194_v47, 0.0 }
  0xec   :  { %v196_v49 = vpack.c.bf16 %v195_v48, %v195_v48 }
  0xed   :  { %562 = dma.done.wait [#allocation3 + $0x1], 1024 }
  0xee   :  { %563 = vsyncadd [#allocation3 + $0x1], 4294966272  ;;  %v423_v50 = vld [vmem:[#allocation2 + $0x78] sm:$0xff]  ;;  %v422_v51 = vld [vmem:[#allocation2 + $0x70] sm:$0xff]  ;;  %s571_s3 = smov [#allocation9]   ;;  %s318_s14 = sshll.u32 %s631_s5, 4  ;;  %s319_s14 = int_to_ptr.hbm [resolvable:$true] %s318_s14 }
  0xef   :  { %263 = vmatpush.bf16.msra.mxu1 %v423_v50  ;;  %v421_v52 = vld [vmem:[#allocation2 + $0x68] sm:$0xff]  ;;  %v420_v53 = vld [vmem:[#allocation2 + $0x60] sm:$0xff]  ;;  %v419_v54 = vld [vmem:[#allocation2 + $0x58] sm:$0xff]  ;;  %s316_s11 = sshll.u32 %s571_s3, 4  ;;  %s317_s11 = int_to_ptr.vmem [resolvable:$true] %s316_s11 }
  0xf0   :  { %v418_v55 = vld [vmem:[#allocation2 + $0x50] sm:$0xff]  ;;  %v417_v56 = vld [vmem:[#allocation2 + $0x48] sm:$0xff]  ;;  %v416_v57 = vld [vmem:[#allocation2 + $0x40] sm:$0xff] }
  0xf1   :  { %v276_v17 = vld [vmem:[#allocation7] sm:$0x3] }
  0xf2   :  { %v305_v20 = vperm.slane %v276_v17, 0  ;;  %v307_v24 = vperm.slane %v276_v17, 1 }
  0xf3   :  { %264 = vmatpush.bf16.msra.mxu1 %v422_v51 }
  0xf7   :  { %265 = vmatpush.bf16.msra.mxu1 %v421_v52 }
  0xfb   :  { %266 = vmatpush.bf16.msra.mxu1 %v420_v53 }
  0xff   :  { %267 = vmatpush.bf16.msra.mxu1 %v419_v54 }
 0x103   :  { %268 = vmatpush.bf16.msra.mxu1 %v418_v55 }
 0x107   :  { %269 = vmatpush.bf16.msra.mxu1 %v417_v56 }
 0x10b   :  { %270 = vmatpush.bf16.msra.mxu1 %v416_v57 }
 0x10e   :  { %271 = vmatmul.bf16.vlgmr.msra.gmra.mxu1 %v196_v49 }
 0x18b   :  { %v272_v58 = vpop.f32.mrf.mxu1 }
 0x18c   :  { %v277_v59 = vrot.slane %v272_v58, 4 }
 0x18e   :  { %v278_v60 = vadd.f32 %v277_v59, %v272_v58 }
 0x190   :  { %v279_v61 = vrot.slane %v278_v60, 2 }
 0x192   :  { %v280_v62 = vadd.f32 %v279_v61, %v278_v60 }
 0x193   :  { %v274_v63 = vpop.f32.mrf.mxu1 }
 0x194   :  { %v281_v0 = vrot.slane %v280_v62, 1 }
 0x196   :  { %v282_v1 = vadd.f32 %v281_v0, %v280_v62 }
 0x198   :  { %v283_v2 = vmul.f32 %v282_v1, %v614_v22 }
 0x19a   :  { %v284_v3 = vsub.f32 %v272_v58, %v283_v2 }
 0x19c   :  { %v285_v4 = vmul.f32 %v284_v3, %v284_v3 }
 0x19e   :  { %v286_v5 = vrot.slane %v285_v4, 4 }
 0x1a0   :  { %v287_v6 = vadd.f32 %v286_v5, %v285_v4 }
 0x1a2   :  { %v288_v7 = vrot.slane %v287_v6, 2 }
 0x1a4   :  { %v289_v8 = vadd.f32 %v288_v7, %v287_v6 }
 0x1a6   :  { %v290_v9 = vrot.slane %v289_v8, 1 }
 0x1a8   :  { %v291_v10 = vadd.f32 %v290_v9, %v289_v8 }
 0x1aa   :  { %v292_v11 = vmul.f32 %v291_v10, %v614_v22 }
 0x1ac   :  { %v293_v12 = vadd.f32 1e-05, %v292_v11 }
 0x1ae   :  { %434 = vrsqrt.f32 %v293_v12  ;;  %vm300_vm5 = vweird.f32 %v293_v12 }
 0x1b4   :  { %v435_v13 = vpop.eup %434 }
 0x1b5   :  { %v295_v14 = vmul.f32 %v435_v13, %v293_v12  ;;  %vm301_vm4 = vweird.f32 %v435_v13 }
 0x1b6   :  { %vm302_vm6 = vmor %vm300_vm5, %vm301_vm4 }
 0x1b7   :  { %v296_v15 = vmul.f32 %v435_v13, %v295_v14 }
 0x1b9   :  { %v297_v16 = vmul.f32 0.5, %v296_v15 }
 0x1bb   :  { %v298_v18 = vsub.f32 1.5, %v297_v16 }
 0x1bd   :  { %v299_v19 = vmul.f32 %v435_v13, %v298_v18 }
 0x1bf   :  { %v303_v21 = vsel %vm302_vm6, %v435_v13, %v299_v19 }
 0x1c0   :  { %v304_v23 = vmul.f32 %v303_v21, %v284_v3 }
 0x1c2   :  { %v306_v25 = vmul.f32 %v305_v20, %v304_v23 }
 0x1c4   :  { %v308_v22 = vadd.f32 %v307_v24, %v306_v25 }
 0x1c6   :  { %v309_v26 = vmax.f32 %v308_v22, 0.0 }
 0x1c8   :  { %310 = vst [vmem:[#allocation9] sm:$0xff] %v309_v26 }
 0x1c9   :  { %321 = dma.vmem_to_hbm [thread:$0]  %s317_s11, 128, %s319_s14, [#allocation6]  }
 0x1ca   :  { %564 = dma.done.wait [#allocation6], 128  }
 0x1cb   :  { %565 = vsyncadd [#allocation6], 4294967168 }
 0x1cc   :  { %326 = vsyncpa [#allocation5], 1 }
 0x1cd   :  { %327 = vsyncpa [#allocation8], 1 }
 0x1ce   :  { %328 = vsyncpa [#allocation6], 1 }
 0x1cf   :  { %329 = vsyncmov [#allocation3] }
 0x1d2   :  { %s330_s15 = vpop.sfrf %329 }
 0x1d3   :  { %p406_p0 = scmp.ne.s32.totalorder %s330_s15, 0 }
 0x1d5   :  { %334 = shalt.err (%p406_p0)  }
 0x1d6   :  { %336 = vsyncmov [#allocation3 + $0x1] }
 0x1d9   :  { %s337_s16 = vpop.sfrf %336 }
 0x1da   :  { %p407_p1 = scmp.ne.s32.totalorder %s337_s16, 0 }
 0x1dc   :  { %341 = shalt.err (%p407_p1)  }

</bundles_post_ra>
